<compile_context>
chip_gen: v5e
topology: v5e:2x2
jax: 0.10.0
libtpu: 0.0.40
codegen_flags: <defaults>
</compile_context>

<pallas_src>
import functools
import math

import jax
import jax.numpy as jnp
from jax.experimental import pallas as pl
from jax.experimental.pallas import tpu as pltpu


# PyTorch nn.GELU() default is exact erf.  tanh-approx lowers to the EUP (own
# VLIW slot) instead of a long VALU polynomial; per-element delta < ~3e-3.
_APPROX_GELU = True


def _gelu(x):
    return jax.nn.gelu(x, approximate=_APPROX_GELU)


def _layernorm(x, gamma, beta, eps=1e-6):
    mean = jnp.mean(x, axis=-1, keepdims=True)
    var = jnp.mean(jnp.square(x - mean), axis=-1, keepdims=True)
    inv = jax.lax.rsqrt(var + eps)
    return (x - mean) * inv * gamma + beta


def _const_spec(shape):
    """BlockSpec for a grid-invariant operand; single-buffered when supported."""
    index_map = lambda *_: (0,) * len(shape)
    if hasattr(pl, "Buffered"):
        try:
            return pl.BlockSpec(shape, index_map, pipeline_mode=pl.Buffered(1))
        except TypeError:
            pass
    return pl.BlockSpec(shape, index_map)


# --------------------------------------------------------------------------
# Kernel A: fused Q/K/V projection, head-major bf16 output
# --------------------------------------------------------------------------
def qkv_proj_kernel(x_ref, wq_ref, wk_ref, wv_ref, q_ref, k_ref, v_ref,
                    *, num_heads):
    x = x_ref[0]                                          # (TS, D) bf16
    ts, d = x.shape
    dk = d // num_heads

    def project(w_ref, out_ref):
        y = jnp.dot(x, w_ref[...], preferred_element_type=jnp.float32)  # (TS, D)
        yh = y.reshape(ts, num_heads, dk).transpose(1, 0, 2)             # (H, TS, dk)
        out_ref[0] = yh.astype(jnp.bfloat16)

    project(wq_ref, q_ref)
    project(wk_ref, k_ref)
    project(wv_ref, v_ref)


def _qkv_projection(x_bf, wq, wk, wv, num_heads, ts, vmem_limit):
    B, S, D = x_bf.shape
    dk = D // num_heads
    out_sds = jax.ShapeDtypeStruct((B, num_heads, S, dk), jnp.bfloat16)
    out_spec = pl.BlockSpec((1, num_heads, ts, dk), lambda b, s: (b, 0, s, 0))
    return pl.pallas_call(
        functools.partial(qkv_proj_kernel, num_heads=num_heads),
        out_shape=(out_sds, out_sds, out_sds),
        grid_spec=pltpu.PrefetchScalarGridSpec(
            num_scalar_prefetch=0,
            grid=(B, S // ts),
            in_specs=[
                pl.BlockSpec((1, ts, D), lambda b, s: (b, s, 0)),
                _const_spec((D, D)), _const_spec((D, D)), _const_spec((D, D)),
            ],
            out_specs=[out_spec, out_spec, out_spec],
        ),
        compiler_params=pltpu.CompilerParams(
            dimension_semantics=("parallel", "parallel"),
            vmem_limit_bytes=vmem_limit,
        ),
    )(x_bf, wq, wk, wv)


# --------------------------------------------------------------------------
# Kernel B: flash attention (kv grid axis) + W_h + LN1 + FFN + GELU + LN2
# --------------------------------------------------------------------------
def attn_ffn_kernel(
    x_ref,                      # (1, TQ, D) f32   residual / LayerNorm path
    q_ref, k_ref, v_ref,        # (1, H, TQ, dk) / (1, H, TKV, dk) bf16
    wh_ref, bh_ref,             # (H, dk, D) bf16, (1, D) f32
    w1_ref, b1_ref,             # (D, Hff) bf16,  (1, Hff) f32
    w2_ref, b2_ref,             # (Hff, D) bf16,  (1, D) f32
    g1_ref, be1_ref,            # (1, D) f32
    g2_ref, be2_ref,            # (1, D) f32
    o_ref,                      # (1, TQ, D)
    m_ref, l_ref, acc_ref,      # VMEM scratch: (H,TQ,1), (H,TQ,1), (H,TQ,dk) f32
    *, num_heads,
):
    kv = pl.program_id(2)

    @pl.when(kv == 0)
    def _init():
        m_ref[...] = jnp.full(m_ref.shape, -jnp.inf, m_ref.dtype)
        l_ref[...] = jnp.zeros(l_ref.shape, l_ref.dtype)
        acc_ref[...] = jnp.zeros(acc_ref.shape, acc_ref.dtype)

    q = q_ref[0]                                          # (H, TQ, dk)  bf16
    k = k_ref[0]                                          # (H, TKV, dk) bf16
    v = v_ref[0]                                          # (H, TKV, dk) bf16

    # ---- online-softmax (flash) update for this key/value tile --------------
    s = jnp.einsum("hqd,hkd->hqk", q, k,
                   preferred_element_type=jnp.float32)    # (H, TQ, TKV)
    m_prev = m_ref[...]
    m_new = jnp.maximum(m_prev, jnp.max(s, axis=-1, keepdims=True))
    alpha = jnp.exp(m_prev - m_new)
    p = jnp.exp(s - m_new)                                # unnormalized probs
    l_ref[...] = alpha * l_ref[...] + jnp.sum(p, axis=-1, keepdims=True)
    acc_ref[...] = alpha * acc_ref[...] + jnp.einsum(
        "hqk,hkd->hqd", p.astype(jnp.bfloat16), v,
        preferred_element_type=jnp.float32)               # (H, TQ, dk)
    m_ref[...] = m_new

    # ---- epilogue on the last kv step ---------------------------------------
    @pl.when(kv == pl.num_programs(2) - 1)
    def _epilogue():
        x = x_ref[0]                                      # (TQ, D) f32
        tq, d = x.shape

        bh = bh_ref[...]
        b1 = b1_ref[...]
        b2 = b2_ref[...]
        g1, be1 = g1_ref[...], be1_ref[...]
        g2, be2 = g2_ref[...], be2_ref[...]

        # normalize AFTER the PV matmul: O(H*TQ*dk) multiplies, not O(H*TQ*S)
        inv_l = pl.reciprocal(l_ref[...], approx=True)    # (H, TQ, 1)
        ctx = acc_ref[...] * inv_l                        # (H, TQ, dk)

        # W_h stored head-major (H, dk, D): per-head accumulate, no ctx relayout
        attn = jnp.zeros((tq, d), jnp.float32)
        for h in range(num_heads):
            attn = attn + jnp.dot(ctx[h].astype(jnp.bfloat16), wh_ref[h],
                                  preferred_element_type=jnp.float32)
        attn = attn + bh

        x1 = _layernorm(x + attn, g1, be1, eps=1e-6)

        hdn = jnp.dot(x1.astype(jnp.bfloat16), w1_ref[...],
                      preferred_element_type=jnp.float32) + b1
        hdn = _gelu(hdn)
        ff = jnp.dot(hdn.astype(jnp.bfloat16), w2_ref[...],
                     preferred_element_type=jnp.float32) + b2
        ff = _gelu(ff)                                    # EncoderLayer.activation

        o_ref[0] = _layernorm(x1 + ff, g2, be2, eps=1e-6).astype(o_ref.dtype)


def _attention_ffn(x, q, k, v, prepped, num_heads, tq, tkv, vmem_limit):
    B, S, D = x.shape
    dk = D // num_heads
    Hff = prepped["w1"].shape[1]

    in_specs = [
        pl.BlockSpec((1, tq, D), lambda b, qi, ki: (b, qi, 0)),                 # x
        pl.BlockSpec((1, num_heads, tq, dk), lambda b, qi, ki: (b, 0, qi, 0)),  # q
        pl.BlockSpec((1, num_heads, tkv, dk), lambda b, qi, ki: (b, 0, ki, 0)), # k
        pl.BlockSpec((1, num_heads, tkv, dk), lambda b, qi, ki: (b, 0, ki, 0)), # v
        _const_spec((num_heads, dk, D)), _const_spec((1, D)),                   # wh, bh
        _const_spec((D, Hff)), _const_spec((1, Hff)),                           # w1, b1
        _const_spec((Hff, D)), _const_spec((1, D)),                             # w2, b2
        _const_spec((1, D)), _const_spec((1, D)),                               # ln1
        _const_spec((1, D)), _const_spec((1, D)),                               # ln2
    ]

    return pl.pallas_call(
        functools.partial(attn_ffn_kernel, num_heads=num_heads),
        out_shape=jax.ShapeDtypeStruct((B, S, D), x.dtype),
        grid_spec=pltpu.PrefetchScalarGridSpec(
            num_scalar_prefetch=0,
            grid=(B, S // tq, S // tkv),
            in_specs=in_specs,
            out_specs=pl.BlockSpec((1, tq, D), lambda b, qi, ki: (b, qi, 0)),
            scratch_shapes=[
                pltpu.VMEM((num_heads, tq, 1), jnp.float32),
                pltpu.VMEM((num_heads, tq, 1), jnp.float32),
                pltpu.VMEM((num_heads, tq, dk), jnp.float32),
            ],
        ),
        compiler_params=pltpu.CompilerParams(
            dimension_semantics=("parallel", "parallel", "arbitrary"),
            vmem_limit_bytes=vmem_limit,
        ),
    )(
        x, q, k, v,
        prepped["wh"], prepped["bh"],
        prepped["w1"], prepped["b1"],
        prepped["w2"], prepped["b2"],
        prepped["ln1_g"], prepped["ln1_b"],
        prepped["ln2_g"], prepped["ln2_b"],
    )


# --------------------------------------------------------------------------
# Generation-aware tiling / VMEM budget
# --------------------------------------------------------------------------
def _vmem_capacity_bytes():
    try:
        return int(pltpu.get_tpu_info().vmem_capacity_bytes)
    except Exception:
        return 64 * 1024 * 1024          # conservative: v7x per-TensorCore VMEM


def _divisible_tile(S, cap):
    """Largest t <= cap with S % t == 0 and (t % 8 == 0 or t == S)."""
    if S <= cap:
        return S
    t = (cap // 8) * 8
    while t >= 8:
        if S % t == 0:
            return t
        t -= 8
    return S


def _tiling_plan(S, D, Hff, num_heads, vmem_cap):
    """Query/key tile sizes + vmem limit (v5e/v6e: 128 MiB; v7x: 64 MiB)."""
    vmem_limit = int(vmem_cap * 0.78)    # ~100 MiB on 128 MiB parts, ~50 MiB on v7x
    big_vmem = vmem_cap >= 96 * 1024 * 1024
    tq = _divisible_tile(S, 1024 if big_vmem else 512)
    tkv = _divisible_tile(S, 1024 if big_vmem else 512)

    def fits(tq_, tkv_):
        weights = 2 * (D * D + 2 * D * Hff)                  # bf16, single-buffered
        blocks = (2 * tq_ * D * 2                            # q (bf16, x2 buffers)
                  + 2 * 2 * tkv_ * D * 2                     # k + v
                  + 2 * 2 * tq_ * D * 4)                     # x + out (f32)
        scratch = tq_ * D * 4 + 2 * num_heads * tq_ * 4
        live = 2 * num_heads * tq_ * tkv_ * 4 + tq_ * Hff * 6
        return weights + blocks + scratch + live < 0.8 * vmem_limit

    for _ in range(64):
        if fits(tq, tkv):
            break
        if tkv > 8:
            new = _divisible_tile(S, max(tkv - 8, 8))
            if new < tkv:
                tkv = new
                continue
        if tq > 8:
            new = _divisible_tile(S, max(tq - 8, 8))
            if new < tq:
                tq = new
                continue
        break
    return tq, tkv, vmem_limit


# --------------------------------------------------------------------------
# Parameter prep / public entry point
# --------------------------------------------------------------------------
def prepare_params(params, num_heads):
    """Fold 1/sqrt(d_k) into W_q, cast matmul weights to bf16, store W_h head-major."""
    D = params["wq"].shape[0]
    dk = D // num_heads
    p = dict(params)
    p["wq"] = (params["wq"] * (1.0 / math.sqrt(dk))).astype(jnp.bfloat16)
    p["wk"] = params["wk"].astype(jnp.bfloat16)
    p["wv"] = params["wv"].astype(jnp.bfloat16)
    # (in=D, out=D) -> (H, dk, D): block h is exactly head h's slice of W_h.
    p["wh"] = params["wh"].reshape(num_heads, dk, D).astype(jnp.bfloat16)
    p["w1"] = params["w1"].astype(jnp.bfloat16)
    p["w2"] = params["w2"].astype(jnp.bfloat16)
    # TODO(synk): on v7x, w1/w2 (and optionally wq..wh) could use fp8 storage with
    # per-tensor scales (~2x FFN MXU throughput); needs scale plumbing, not done here.
    return p


def encoder_layer(x, prepped, num_heads):
    """x: (B, S, D) float32. prepped: output of prepare_params()."""
    B, S, D = x.shape
    Hff = prepped["w1"].shape[1]
    cap = _vmem_capacity_bytes()
    tq, tkv, vmem_limit = _tiling_plan(S, D, Hff, num_heads, cap)

    # bf16 copy of x feeds only the MXU projections (halves that DMA);
    # fp32 x tiles are kept for the residual / LayerNorm path.
    x_bf = x.astype(jnp.bfloat16)
    q, k, v = _qkv_projection(x_bf, prepped["wq"], prepped["wk"], prepped["wv"],
                              num_heads, tq, vmem_limit)
    return _attention_ffn(x, q, k, v, prepped, num_heads, tq, tkv, vmem_limit)


# --------------------------------------------------------------------------
# Init + pure-JAX fp32 reference (PyTorch semantics: exact GELU)
# --------------------------------------------------------------------------
def init_params(key, embed_dim, embed_hidden_dim):
    ks = jax.random.split(key, 8)
    s = lambda fan_in: 1.0 / math.sqrt(fan_in)
    D, H = embed_dim, embed_hidden_dim
    return {
        # (in, out) layout, fp32 master copies
        "wq": jax.random.normal(ks[0], (D, D), jnp.float32) * s(D),
        "wk": jax.random.normal(ks[1], (D, D), jnp.float32) * s(D),
        "wv": jax.random.normal(ks[2], (D, D), jnp.float32) * s(D),
        "wh": jax.random.normal(ks[3], (D, D), jnp.float32) * s(D),
        "bh": jax.random.normal(ks[4], (1, D), jnp.float32) * 0.01,
        "w1": jax.random.normal(ks[5], (D, H), jnp.float32) * s(D),
        "b1": jax.random.normal(ks[6], (1, H), jnp.float32) * 0.01,
        "w2": jax.random.normal(ks[7], (H, D), jnp.float32) * s(H),
        "b2": jnp.zeros((1, D), jnp.float32),
        "ln1_g": jnp.ones((1, D), jnp.float32),
        "ln1_b": jnp.zeros((1, D), jnp.float32),
        "ln2_g": jnp.ones((1, D), jnp.float32),
        "ln2_b": jnp.zeros((1, D), jnp.float32),
    }


def _reference(x, p, num_heads):
    B, S, D = x.shape
    dk = D // num_heads

    def split(y):  # (B, S, D) -> (B, H, S, dk)
        return y.reshape(B, S, num_heads, dk).transpose(0, 2, 1, 3)

    q = split(x @ p["wq"]) / math.sqrt(dk)
    k = split(x @ p["wk"])
    v = split(x @ p["wv"])
    a = jax.nn.softmax(jnp.einsum("bhqd,bhkd->bhqk", q, k), axis=-1)
    h = jnp.einsum("bhqk,bhkd->bhqd", a, v).transpose(0, 2, 1, 3).reshape(B, S, D)
    attn = h @ p["wh"] + p["bh"]

    def ln(y, g, b):
        m = y.mean(-1, keepdims=True)
        var = ((y - m) ** 2).mean(-1, keepdims=True)
        return (y - m) / jnp.sqrt(var + 1e-6) * g + b

    x1 = ln(x + attn, p["ln1_g"], p["ln1_b"])
    ff = jax.nn.gelu(x1 @ p["w1"] + p["b1"], approximate=False) @ p["w2"] + p["b2"]
    ff = jax.nn.gelu(ff, approximate=False)
    return ln(x1 + ff, p["ln2_g"], p["ln2_b"])


if __name__ == "__main__":
    B, S, D = 2, 8, 32
    NUM_HEADS = 4
    HIDDEN = 64

    key = jax.random.PRNGKey(0)
    kx, kp = jax.random.split(key)
    x = jax.random.normal(kx, (B, S, D), jnp.float32)
    params = init_params(kp, D, HIDDEN)
    prepped = prepare_params(params, NUM_HEADS)

    out = encoder_layer(x, prepped, NUM_HEADS)
    out = jax.block_until_ready(out)

    ref = _reference(x, params, NUM_HEADS)
    assert out.shape == (B, S, D)
    # bf16 MXU matmuls (fp32 accumulation) + tanh GELU vs fp32/erf reference.
    max_err = float(jnp.max(jnp.abs(out - ref)))
    assert max_err < 1e-1, f"mismatch vs JAX reference, max_err={max_err}"

    print("KERNEL_OK")
</pallas_src>

<mosaic_0001>
module attributes {stable_mosaic.version = 11 : i64} {
  func.func @qkv_proj_kernel(%arg0: i32, %arg1: i32, %arg2: memref<1x8x32xbf16, #tpu.memory_space<vmem>>, %arg3: memref<32x32xbf16, #tpu.memory_space<vmem>>, %arg4: memref<32x32xbf16, #tpu.memory_space<vmem>>, %arg5: memref<32x32xbf16, #tpu.memory_space<vmem>>, %arg6: memref<1x4x8x8xbf16, #tpu.memory_space<vmem>>, %arg7: memref<1x4x8x8xbf16, #tpu.memory_space<vmem>>, %arg8: memref<1x4x8x8xbf16, #tpu.memory_space<vmem>>) attributes {dimension_semantics = [#tpu.dimension_semantics<parallel>, #tpu.dimension_semantics<parallel>], iteration_bounds = array<i64: 2, 1>, scalar_prefetch = 0 : i64, scratch_operands = 0 : i64, tpu.core_type = #tpu.core_type<tc>, window_params = [{transform_indices = @transform_0, window_bounds = array<i64: 1, 8, 32>}, {pipeline_mode = #tpu.pipeline_mode<synchronous>, transform_indices = @transform_1, window_bounds = array<i64: 32, 32>}, {pipeline_mode = #tpu.pipeline_mode<synchronous>, transform_indices = @transform_2, window_bounds = array<i64: 32, 32>}, {pipeline_mode = #tpu.pipeline_mode<synchronous>, transform_indices = @transform_3, window_bounds = array<i64: 32, 32>}, {transform_indices = @transform_4, window_bounds = array<i64: 1, 4, 8, 8>}, {transform_indices = @transform_5, window_bounds = array<i64: 1, 4, 8, 8>}, {transform_indices = @transform_6, window_bounds = array<i64: 1, 4, 8, 8>}]} {
    %c0 = arith.constant 0 : index
    %c0_0 = arith.constant 0 : index
    %c0_1 = arith.constant 0 : index
    %0 = vector.load %arg2[%c0, %c0_0, %c0_1] : memref<1x8x32xbf16, #tpu.memory_space<vmem>>, vector<1x8x32xbf16>
    %1 = vector.shape_cast %0 : vector<1x8x32xbf16> to vector<8x32xbf16>
    %c0_2 = arith.constant 0 : index
    %c0_3 = arith.constant 0 : index
    %2 = vector.load %arg3[%c0_2, %c0_3] : memref<32x32xbf16, #tpu.memory_space<vmem>>, vector<32x32xbf16>
    %cst = arith.constant dense<0.000000e+00> : vector<8x32xf32>
    %3 = tpu.matmul %1, %2, %cst {dimension_numbers = #tpu.dot_dimension_numbers<[1], [0], [0], [1], [0, 0, 1, 1], [], []>} : vector<8x32xbf16>, vector<32x32xbf16>, vector<8x32xf32> -> vector<8x32xf32>
    %4 = vector.shape_cast %3 : vector<8x32xf32> to vector<8x4x8xf32>
    %5 = tpu.transpose %4, [1, 0, 2] : vector<8x4x8xf32> -> vector<4x8x8xf32>
    %6 = arith.truncf %5 : vector<4x8x8xf32> to vector<4x8x8xbf16>
    %c0_4 = arith.constant 0 : index
    %c0_5 = arith.constant 0 : index
    %c0_6 = arith.constant 0 : index
    %c0_7 = arith.constant 0 : index
    %7 = vector.load %arg6[%c0_4, %c0_5, %c0_6, %c0_7] : memref<1x4x8x8xbf16, #tpu.memory_space<vmem>>, vector<1x4x8x8xbf16>
    %8 = vector.shape_cast %7 : vector<1x4x8x8xbf16> to vector<4x8x8xbf16>
    %9 = vector.shape_cast %6 : vector<4x8x8xbf16> to vector<1x4x8x8xbf16>
    tpu.vector_store %arg6[%c0_4, %c0_5, %c0_6, %c0_7], %9 {strides = array<i32>} : memref<1x4x8x8xbf16, #tpu.memory_space<vmem>>, vector<1x4x8x8xbf16>,
    %c0_8 = arith.constant 0 : index
    %c0_9 = arith.constant 0 : index
    %10 = vector.load %arg4[%c0_8, %c0_9] : memref<32x32xbf16, #tpu.memory_space<vmem>>, vector<32x32xbf16>
    %cst_10 = arith.constant dense<0.000000e+00> : vector<8x32xf32>
    %11 = tpu.matmul %1, %10, %cst_10 {dimension_numbers = #tpu.dot_dimension_numbers<[1], [0], [0], [1], [0, 0, 1, 1], [], []>} : vector<8x32xbf16>, vector<32x32xbf16>, vector<8x32xf32> -> vector<8x32xf32>
    %12 = vector.shape_cast %11 : vector<8x32xf32> to vector<8x4x8xf32>
    %13 = tpu.transpose %12, [1, 0, 2] : vector<8x4x8xf32> -> vector<4x8x8xf32>
    %14 = arith.truncf %13 : vector<4x8x8xf32> to vector<4x8x8xbf16>
    %c0_11 = arith.constant 0 : index
    %c0_12 = arith.constant 0 : index
    %c0_13 = arith.constant 0 : index
    %c0_14 = arith.constant 0 : index
    %15 = vector.load %arg7[%c0_11, %c0_12, %c0_13, %c0_14] : memref<1x4x8x8xbf16, #tpu.memory_space<vmem>>, vector<1x4x8x8xbf16>
    %16 = vector.shape_cast %15 : vector<1x4x8x8xbf16> to vector<4x8x8xbf16>
    %17 = vector.shape_cast %14 : vector<4x8x8xbf16> to vector<1x4x8x8xbf16>
    tpu.vector_store %arg7[%c0_11, %c0_12, %c0_13, %c0_14], %17 {strides = array<i32>} : memref<1x4x8x8xbf16, #tpu.memory_space<vmem>>, vector<1x4x8x8xbf16>,
    %c0_15 = arith.constant 0 : index
    %c0_16 = arith.constant 0 : index
    %18 = vector.load %arg5[%c0_15, %c0_16] : memref<32x32xbf16, #tpu.memory_space<vmem>>, vector<32x32xbf16>
    %cst_17 = arith.constant dense<0.000000e+00> : vector<8x32xf32>
    %19 = tpu.matmul %1, %18, %cst_17 {dimension_numbers = #tpu.dot_dimension_numbers<[1], [0], [0], [1], [0, 0, 1, 1], [], []>} : vector<8x32xbf16>, vector<32x32xbf16>, vector<8x32xf32> -> vector<8x32xf32>
    %20 = vector.shape_cast %19 : vector<8x32xf32> to vector<8x4x8xf32>
    %21 = tpu.transpose %20, [1, 0, 2] : vector<8x4x8xf32> -> vector<4x8x8xf32>
    %22 = arith.truncf %21 : vector<4x8x8xf32> to vector<4x8x8xbf16>
    %c0_18 = arith.constant 0 : index
    %c0_19 = arith.constant 0 : index
    %c0_20 = arith.constant 0 : index
    %c0_21 = arith.constant 0 : index
    %23 = vector.load %arg8[%c0_18, %c0_19, %c0_20, %c0_21] : memref<1x4x8x8xbf16, #tpu.memory_space<vmem>>, vector<1x4x8x8xbf16>
    %24 = vector.shape_cast %23 : vector<1x4x8x8xbf16> to vector<4x8x8xbf16>
    %25 = vector.shape_cast %22 : vector<4x8x8xbf16> to vector<1x4x8x8xbf16>
    tpu.vector_store %arg8[%c0_18, %c0_19, %c0_20, %c0_21], %25 {strides = array<i32>} : memref<1x4x8x8xbf16, #tpu.memory_space<vmem>>, vector<1x4x8x8xbf16>,
    return
  }
  func.func @transform_0(%arg0: i32, %arg1: i32) -> (i32, i32, i32) {
    %c0_i32 = arith.constant 0 : i32
    %c0_i32_0 = arith.constant 0 : i32
    return %arg0, %arg1, %c0_i32 : i32, i32, i32
  }
  func.func @transform_1(%arg0: i32, %arg1: i32) -> (i32, i32) {
    %c0_i32 = arith.constant 0 : i32
    %c0_i32_0 = arith.constant 0 : i32
    %c0_i32_1 = arith.constant 0 : i32
    return %c0_i32, %c0_i32_0 : i32, i32
  }
  func.func @transform_2(%arg0: i32, %arg1: i32) -> (i32, i32) {
    %c0_i32 = arith.constant 0 : i32
    %c0_i32_0 = arith.constant 0 : i32
    %c0_i32_1 = arith.constant 0 : i32
    return %c0_i32, %c0_i32_0 : i32, i32
  }
  func.func @transform_3(%arg0: i32, %arg1: i32) -> (i32, i32) {
    %c0_i32 = arith.constant 0 : i32
    %c0_i32_0 = arith.constant 0 : i32
    %c0_i32_1 = arith.constant 0 : i32
    return %c0_i32, %c0_i32_0 : i32, i32
  }
  func.func @transform_4(%arg0: i32, %arg1: i32) -> (i32, i32, i32, i32) {
    %c0_i32 = arith.constant 0 : i32
    %c0_i32_0 = arith.constant 0 : i32
    %c0_i32_1 = arith.constant 0 : i32
    return %arg0, %c0_i32, %arg1, %c0_i32_0 : i32, i32, i32, i32
  }
  func.func @transform_5(%arg0: i32, %arg1: i32) -> (i32, i32, i32, i32) {
    %c0_i32 = arith.constant 0 : i32
    %c0_i32_0 = arith.constant 0 : i32
    %c0_i32_1 = arith.constant 0 : i32
    return %arg0, %c0_i32, %arg1, %c0_i32_0 : i32, i32, i32, i32
  }
  func.func @transform_6(%arg0: i32, %arg1: i32) -> (i32, i32, i32, i32) {
    %c0_i32 = arith.constant 0 : i32
    %c0_i32_0 = arith.constant 0 : i32
    %c0_i32_1 = arith.constant 0 : i32
    return %arg0, %c0_i32, %arg1, %c0_i32_0 : i32, i32, i32, i32
  }
}

</mosaic_0001>

<bundles_post_ra>
// kernel: tpu_custom_call.1
= control target key start
LH: loop header
LB: loop body
LE: loop exit
PB: predicated region body
PF: predicated region fallthrough
CT: control target
= control target key end

     0   :  { %s2005_s0 = inlined_call_operand.hbm [shape: bf16[2,8,32], index: 0, kind: input, shape index: {}]   ;;  %s2006_s1 = inlined_call_operand.hbm [shape: bf16[32,32], index: 1, kind: input, shape index: {}]   ;;  %s2007_s2 = inlined_call_operand.hbm [shape: bf16[32,32], index: 2, kind: input, shape index: {}]   ;;  %s2008_s3 = inlined_call_operand.hbm [shape: bf16[32,32], index: 3, kind: input, shape index: {}]   ;;  %s2009_s4 = inlined_call_operand.hbm [shape: bf16[2,4,8,8], index: 4, kind: output, shape index: {0}]   ;;  %s2010_s5 = inlined_call_operand.hbm [shape: bf16[2,4,8,8], index: 5, kind: output, shape index: {1}]   ;;  %s2011_s6 = inlined_call_operand.hbm [shape: bf16[2,4,8,8], index: 6, kind: output, shape index: {2}]  }
   0x1   :  { %2013 = sst [smem:[#allocation19_spill]] %s2005_s0 }
   0x2   :  { %2014 = sst [smem:[#allocation20_spill]] %s2006_s1 }
   0x3   :  { %2015 = sst [smem:[#allocation21_spill]] %s2007_s2 }
   0x4   :  { %12 = vsyncpa [#allocation3], 0 }
   0x5   :  { %14 = vsyncpa [#allocation3 + $0x1], 0 }
   0x6   :  { %15 = vsyncpa [#allocation6], 0 }
   0x7   :  { %16 = vsyncpa [#allocation9], 0 }
   0x8   :  { %17 = vsyncpa [#allocation4], 0 }
   0x9   :  { %19 = vsyncpa [#allocation4 + $0x1], 0 }
   0xa   :  { %20 = vsyncpa [#allocation12], 0 }
   0xb   :  { %22 = vsyncpa [#allocation12 + $0x1], 0  ;;  %s1590_s21 = smov 0   ;;  %s1592_s22 = smov 0  }
   0xc   :  { %s1594_s23 = smov 0   ;;  %s1596_s24 = smov 0  }
   0xd   :  { %s1598_s25 = smov 0   ;;  %s1600_s26 = smov 0  }
   0xe LB: > { %s1621_s27 = sadd.s32 4294967295, %s1541_s26   ;;  %p1082_p0 = scmp.ge.s32.totalorder %s1541_s26, 1  ;;  %s1541_s26 = sphi %s1600_s26, %s28_s26   ;;  %s1537_s25 = sphi %s1598_s25, %s2030_s25   ;;  %s1533_s24 = sphi %s1596_s24, %s2029_s24   ;;  %s1529_s23 = sphi %s1594_s23, %s2028_s23   ;;  %s1525_s22 = sphi %s1592_s22, %s2027_s22   ;;  %s1521_s21 = sphi %s1590_s21, %s2026_s21  }
   0xf   : > { %p63_p1 = scmp.eq.s32.totalorder %s1621_s27, 0  ;;  %p220_p2 = scmp.lt.s32.totalorder %s1541_s26, 3 }
  0x10   : > { %s2016_s1 = sld [smem:[#allocation20_spill]]  ;;  %s1543_s8 = smov [#allocation5]  }
  0x11   : > { %p1629_p3 = pnand %p1082_p0, %p220_p2  ;;  %s233_s9 = sshll.u32 %s1543_s8, 4  ;;  %s234_s9 = int_to_ptr.vmem [resolvable:$true] %s233_s9 }
  0x12   : > { %p1086_p6 = scmp.ge.s32.totalorder %s1541_s26, 2  ;;  %s2019_s2 = sld [smem:[#allocation21_spill]] }
  0x13   : > { %p1164_p4 = pneg %p1629_p3  ;;  %s1544_s14 = smov 64  }
  0x14   : > { %s1545_s15 = smov 4   ;;  %s1546_s16 = smov [#allocation7]  }
  0x15   : > { %p1637_p5 = pnand %p1164_p4, %p63_p1  ;;  %s247_s17 = sshll.u32 %s1546_s16, 4  ;;  %s248_s17 = int_to_ptr.vmem [resolvable:$true] %s247_s17 }
  0x16   : > { %s231_s30 = sshll.u32 %s2016_s1, 4  ;;  %s259_s20 = sshll.u32 %s2008_s3, 4  ;;  %s232_s30 = int_to_ptr.hbm [resolvable:$true] %s231_s30  ;;  %s260_s20 = int_to_ptr.hbm [resolvable:$true] %s259_s20 }
  0x17   : > { %1167 = dma.hbm_to_vmem [thread:$0]  (!%p1637_p5), %s232_s30, 256, %s234_s9, [#allocation6], %s1544_s14, %s1544_s14, %s1545_s15  }
  0x18   : > { %s245_s13 = sshll.u32 %s2019_s2, 4  ;;  %s1547_s28 = smov [#allocation8]   ;;  %s246_s13 = int_to_ptr.hbm [resolvable:$true] %s245_s13 }
  0x19   : > { %1170 = dma.hbm_to_vmem [thread:$0]  (!%p1637_p5), %s246_s13, 256, %s248_s17, [#allocation6], %s1544_s14, %s1544_s14, %s1545_s15  }
  0x1a   : > { %s261_s29 = sshll.u32 %s1547_s28, 4  ;;  %s2012_s30 = sadd.s32 4294967294, %s1541_s26   ;;  %s262_s29 = int_to_ptr.vmem [resolvable:$true] %s261_s29 }
  0x1b   : > { %1173 = dma.hbm_to_vmem [thread:$0]  (!%p1637_p5), %s260_s20, 256, %s262_s29, [#allocation9], %s1544_s14, %s1544_s14, %s1545_s15  }
  0x1c   : > { %s40_s8 = sadd.s32 1, %s1537_s25  ;;  %s49_s9 = sadd.s32 1, %s1529_s23 }
  0x1d   : > { %p42_p7 = scmp.ge.s32.totalorder %s40_s8, 2  ;;  %p56_p8 = scmp.ne.s32.totalorder %s1529_s23, %s1525_s22 }
  0x1e   : > { %p57_p9 = scmp.eq.s32.totalorder %s1541_s26, 0  ;;  %p62_p10 = scmp.ne.s32.totalorder %s1525_s22, %s1521_s21 }
  0x1f   : > { %s2032_s8 = smov (%p42_p7, %s40_s8), 0  ;;  %p151_p13 = scmp.eq.s32.totalorder %s1621_s27, 1 }
  0x20   : > { %p1664_p11 = por %p57_p9, %p56_p8  ;;  %p1670_p12 = por %p63_p1, %p62_p10 }
  0x21   : > { %s44_s12 = ssub.s32 %s1537_s25, %s2032_s8  ;;  %p157_p2 = scmp.eq.s32.totalorder %s2012_s30, 1 }
  0x22   : > { %p47_p0 = scmp.eq.s32.totalorder %s44_s12, 0  ;;  %p1679_p4 = por %p151_p13, %p56_p8 }
  0x23   : > { %p1191_p5 = scmp.lt.s32.totalorder %s1541_s26, 2  ;;  %p1687_p7 = por %p157_p2, %p62_p10 }
  0x24   : > { %s1685_s14 = scalar_select %p47_p0, %s1529_s23, %s49_s9  }
  0x25   : > { %s275_s16 = sand.u32 1, %s1529_s23   ;;  %s1088_s18 = sshll.u32 %s1537_s25, 2 }
  0x26   : > { %s1087_s17 = sshll.u32 %s275_s16, 2  ;;  %s2024_s0 = sld [smem:[#allocation19_spill]] }
  0x27   : > { %s279_s29 = scalar_lea.vmem [#allocation2], %s1087_s17  ;;  %p1175_p8 = pnand %p1191_p5, %p1664_p11 }
  0x28   : > { %s288_s12 = sshll.u32 %s279_s29, 4  ;;  %s276_s9 = scalar_lea.sflag [#allocation3], %s275_s16  ;;  %s289_s12 = int_to_ptr.vmem [resolvable:$true] %s288_s12 }
  0x29   : > { %s1701_s1 = sand.u32 (!%p1629_p3), 1, %s1525_s22  }
  0x2a   : > { %297 = sbr.rel (%p1629_p3) target bundleno = 387 (0x183), region = 36  ;;  %s1090_s19 = sshll.u32 (!%p1629_p3), %s1701_s1, 2 }
  0x2b   : > { %s303_s17 = scalar_lea.vmem (!%p1629_p3), [#allocation2], %s1090_s19 }
  0x2c   : > { %s284_s28 = scalar_lea.hbm %s2024_s0, %s1088_s18  ;;  %s300_s18 = scalar_lea.sflag (!%p1629_p3), [#allocation3], %s1701_s1 }
  0x2d   : > { %s286_s30 = sshll.u32 %s284_s28, 4  ;;  %s287_s30 = int_to_ptr.hbm [resolvable:$true] %s286_s30 }
  0x2e   : > { %1177 = dma.hbm_to_vmem [thread:$0]  (!%p1175_p8), %s287_s30, 64, %s289_s12, %s276_s9  }
  0x2f   : > { %1500 = dma.done.wait (%p1670_p12), %s300_s18, 64  }
  0x30   : > { %1502 = vsyncadd (%p1670_p12), %s300_s18, 4294967232 }
  0x31   : > { %1504 = dma.done.wait (%p63_p1), [#allocation6], 512  }
  0x32   : > { %1506 = vsyncadd (%p63_p1), [#allocation6], 4294966784 }
  0x33   : > { %1508 = dma.done.wait (%p63_p1), [#allocation9], 256  }
  0x34   : > { %1510 = vsyncadd (%p63_p1), [#allocation9], 4294967040  ;;  %v1136_v0 = vld [vmem:[#allocation5 + $0x8] sm:$0xff]  ;;  %v1138_v1 = vld [vmem:[#allocation7 + $0x8] sm:$0xff]  ;;  %vm376_vm0 = vcmask 261120   ;;  %s1548_s7 = smov 120  }
  0x35   : > { %v1140_v2 = vld [vmem:[#allocation8 + $0x8] sm:$0xff]  ;;  %386 = vmatpush.bf16.msra.mxu0 %v1136_v0  ;;  %545 = vmatpush.bf16.msra.mxu1 %v1138_v1  ;;  %v1135_v3 = vld [vmem:[#allocation5] sm:$0xff]  ;;  %v1137_v4 = vld [vmem:[#allocation7] sm:$0xff]  ;;  %s1549_s30 = smov 112   ;;  %s1550_s11 = smov 104   ;;  %vm404_vm1 = vcmask 1047556  }
  0x36   : > { %702 = vmatpush.bf16.msra.mxu2 %v1140_v2  ;;  %v1139_v5 = vld [vmem:[#allocation8] sm:$0xff]  ;;  %v359_v6 = vld [vmem:[%s303_s17] sm:$0xf]  ;;  %v1551_v17 = vmov 1983009808   ;;  %s1831_s10 = sshll.u32 %s1533_s24, 4 }
  0x37   : > { %v409_v18 = vunpack.c.l.s4 %v1551_v17  ;;  %v1552_v32 = vmov 1934713408   ;;  %s1841_s16 = sshll.u32 %s1701_s1, 4  ;;  %s878_s28 = scalar_lea.hbm %s2010_s5, %s1831_s10  ;;  %vm518_vm2 = vcmask 60416  }
  0x38   : > { %v433_v33 = vunpack.c.l.s4 %v1552_v32  ;;  %s842_s29 = sand.u32 1, %s1621_s27   ;;  %s350_s12 = scalar_lea.vmem [#allocation11], %s1841_s16 }
  0x39   : > { %387 = vmatpush.bf16.msra.mxu0 %v1135_v3  ;;  %546 = vmatpush.bf16.msra.mxu1 %v1137_v4  ;;  %v1724_v29 = vunpack.c.0.s8 %v409_v18  ;;  %s879_s9 = sshll.u32 %s350_s12, 4  ;;  %s1859_s19 = sshll.u32 %s878_s28, 4  ;;  %s1876_s9 = int_to_ptr.vmem [resolvable:$true] %s879_s9  ;;  %s882_s19 = int_to_ptr.hbm [resolvable:$true] %s1859_s19 }
  0x3a   : > { %703 = vmatpush.bf16.msra.mxu2 %v1139_v5  ;;  %v1737_v45 = vunpack.c.0.s8 %v433_v33  ;;  %s1900_s20 = scalar_lea.sflag [#allocation12], %s842_s29  ;;  %s1405_s28 = sshra.s32 %s882_s19, 4  ;;  %s1406_s28 = int_to_ptr.hbm [resolvable:$true] %s1405_s28 }
  0x3b   : > { %p1412_p10 = scmp.lt.s32.totalorder %s1406_s28, %s2010_s5 }
  0x3c   : > { %1105 = vmatmul.msk.bf16.vlgmr.msra.gmra.mxu0 %vm376_vm0, %v359_v6  ;;  %1114 = vmatmul.msk.bf16.vlgmr.msra.gmra.mxu1 %vm376_vm0, %v359_v6 }
  0x3d   : > { %1123 = vmatmul.msk.bf16.vlgmr.msra.gmra.mxu2 %vm376_vm0, %v359_v6 }
  0xb9   : > { %v389_v7 = vpop.f32.mrf.mxu0  ;;  %v548_v8 = vpop.f32.mrf.mxu1 }
  0xba   : > { %v1261_v9 = vpack.i.bf16 %v389_v7, %v548_v8  ;;  %v406_v21 = vrot.slane %v389_v7, 4  ;;  %v564_v24 = vrot.slane %v548_v8, 4 }
  0xbc   : > { %1262 = vrot.lane.b32.xlu1 %v1261_v9, %s1548_s7  ;;  %1257 = vrot.lane.b32.xlu0 %v1261_v9, %s1549_s30 }
  0xc0   : > { %v1717_v10 = vpop.f32.mrf.mxu2 }
  0xc1   : > { %710 = vrot.lane.b32.xlu2 %v1717_v10, %s1548_s7  ;;  %v391_v11 = vpop.f32.mrf.mxu0  ;;  %v550_v12 = vpop.f32.mrf.mxu1  ;;  %v721_v41 = vrot.slane %v1717_v10, 4  ;;  %s860_s7 = scalar_lea.hbm %s2009_s4, %s1831_s10 }
  0xc2   : > { %s1892_s24 = sshll.u32 %s860_s7, 4  ;;  %s1411_s7 = scalar_lea.hbm %s2010_s5, 32  ;;  %s864_s24 = int_to_ptr.hbm [resolvable:$true] %s1892_s24 }
  0xc4   : > { %1267 = vrot.lane.b32.xlu1 %v1261_v9, %s1550_s11  ;;  %713 = vrot.lane.b32.xlu0 %v1717_v10, %s1549_s30  ;;  %s1889_s30 = scalar_lea.vmem [#allocation10], %s1841_s16 }
  0xc8   : > { %v707_v13 = vpop.f32.mrf.mxu2 }
  0xc9   : > { %716 = vrot.lane.b32.xlu2 %v1717_v10, %s1550_s11  ;;  %s861_s11 = sshll.u32 %s1889_s30, 4  ;;  %s862_s11 = int_to_ptr.vmem [resolvable:$true] %s861_s11 }
 0x11b   : > { %v711_v14 = vpop.permute.xlu2 %710 }
 0x11c   : > { %v733_v25 = vrot.slane %v711_v14, 4 }
 0x123   : > { %v717_v15 = vpop.permute.xlu2 %716 }
 0x124   : > { %v731_v16 = vrot.slane %v717_v15, 4  ;;  %v734_v40 = vsel %vm404_vm1, %v717_v15, %v733_v25 }
 0x125   : > { %v1741_v52 = vperm.slane %v734_v40, %v1724_v29 }
 0x126   : > { %v732_v26 = vsel %vm404_vm1, %v731_v16, %v711_v14 }
 0x127   : > { %v1729_v37 = vperm.slane %v732_v26, %v1724_v29 }
 0x129   : > { %v743_v53 = vrot.slane %v1729_v37, 4 }
 0x12e   : > { %v1263_v19 = vpop.permute.xlu1 %1262  ;;  %v1258_v20 = vpop.permute.xlu0 %1257 }
 0x12f   : > { %v1260_v22 = vunpack.i.h.bf16 %v1258_v20  ;;  %v1259_v23 = vunpack.i.l.bf16 %v1258_v20  ;;  %v1265_v30 = vunpack.i.h.bf16 %v1263_v19  ;;  %v1264_v34 = vunpack.i.l.bf16 %v1263_v19 }
 0x131   : > { %v403_v27 = vrot.slane %v1260_v22, 4  ;;  %v407_v28 = vsel %vm404_vm1, %v1260_v22, %v406_v21  ;;  %v562_v31 = vrot.slane %v1259_v23, 4  ;;  %v565_v36 = vsel %vm404_vm1, %v1259_v23, %v564_v24 }
 0x132   : > { %v415_v38 = vperm.slane %v407_v28, %v1724_v29  ;;  %v418_v42 = vrot.slane %v1265_v30, 4  ;;  %v573_v44 = vperm.slane %v565_v36, %v1724_v29  ;;  %v576_v48 = vrot.slane %v1264_v34, 4 }
 0x133   : > { %v405_v35 = vsel %vm404_vm1, %v403_v27, %v389_v7  ;;  %v563_v39 = vsel %vm404_vm1, %v562_v31, %v548_v8 }
 0x134   : > { %v411_v43 = vperm.slane %v405_v35, %v1724_v29  ;;  %v569_v49 = vperm.slane %v563_v39, %v1724_v29  ;;  %v442_v54 = vrot.slane %v415_v38, 4  ;;  %v600_v61 = vrot.slane %v573_v44, 4 }
 0x136   : > { %v1268_v46 = vpop.permute.xlu1 %1267  ;;  %v714_v47 = vpop.permute.xlu0 %713  ;;  %v430_v60 = vrot.slane %v411_v43, 4  ;;  %v588_v0 = vrot.slane %v569_v49, 4 }
 0x137   : > { %v1270_v50 = vunpack.i.h.bf16 %v1268_v46  ;;  %v1269_v51 = vunpack.i.l.bf16 %v1268_v46  ;;  %v719_v55 = vrot.slane %v714_v47, 4  ;;  %v1751_v3 = vsel %vm404_vm1, %v714_v47, %v721_v41 }
 0x139   : > { %v416_v56 = vrot.slane %v1270_v50, 4  ;;  %v419_v57 = vsel %vm404_vm1, %v1270_v50, %v418_v42  ;;  %v574_v58 = vrot.slane %v1269_v51, 4  ;;  %v577_v59 = vsel %vm404_vm1, %v1269_v51, %v576_v48 }
 0x13a   : > { %v427_v62 = vperm.slane %v419_v57, %v1724_v29  ;;  %v585_v63 = vperm.slane %v577_v59, %v1724_v29  ;;  %v720_v12 = vsel %vm404_vm1, %v719_v55, %v1717_v10 }
 0x13b   : > { %v417_v1 = vsel %vm404_vm1, %v416_v56, %v1265_v30  ;;  %v575_v2 = vsel %vm404_vm1, %v574_v58, %v1264_v34  ;;  %v726_v56 = vperm.slane %v720_v12, %v1724_v29 }
 0x13c   : > { %v423_v4 = vperm.slane %v417_v1, %v1724_v29  ;;  %v440_v5 = vrot.slane %v427_v62, 4  ;;  %v443_v6 = vsel %vm404_vm1, %v427_v62, %v442_v54  ;;  %v581_v7 = vperm.slane %v575_v2, %v1724_v29 }
 0x13d   : > { %v451_v8 = vperm.slane %v443_v6, %v1737_v45  ;;  %v598_v9 = vrot.slane %v585_v63, 4  ;;  %v601_v11 = vsel %vm404_vm1, %v585_v63, %v600_v61 }
 0x13e   : > { %v428_v13 = vrot.slane %v423_v4, 4  ;;  %v431_v14 = vsel %vm404_vm1, %v423_v4, %v430_v60  ;;  %v441_v15 = vsel %vm404_vm1, %v440_v5, %v415_v38  ;;  %v586_v16 = vrot.slane %v581_v7, 4 }
 0x13f   : > { %v439_v17 = vperm.slane %v431_v14, %v1737_v45  ;;  %v447_v18 = vperm.slane %v441_v15, %v1737_v45  ;;  %v458_v19 = vrot.slane %v451_v8, 4  ;;  %v589_v20 = vsel %vm404_vm1, %v581_v7, %v588_v0 }
 0x140   : > { %v429_v21 = vsel %vm404_vm1, %v428_v13, %v411_v43  ;;  %v587_v22 = vsel %vm404_vm1, %v586_v16, %v569_v49  ;;  %v597_v23 = vperm.slane %v589_v20, %v1737_v45  ;;  %v599_v10 = vsel %vm404_vm1, %v598_v9, %v573_v44 }
 0x141   : > { %v435_v24 = vperm.slane %v429_v21, %v1737_v45  ;;  %v454_v25 = vrot.slane %v439_v17, 4  ;;  %v456_v26 = vrot.slane %v447_v18, 4  ;;  %v459_v27 = vsel %vm404_vm1, 0.0, %v458_v19 }
 0x142   : > { %v471_v28 = vsel %vm404_vm1, %v458_v19, %v447_v18  ;;  %v476_v30 = vrot.slane %v459_v27, 4  ;;  %v593_v31 = vperm.slane %v587_v22, %v1737_v45  ;;  %v605_v32 = vperm.slane %v599_v10, %v1737_v45 }
 0x143   : > { %v452_v33 = vrot.slane %v435_v24, 4  ;;  %v455_v34 = vsel %vm404_vm1, 0.0, %v454_v25  ;;  %v457_v35 = vsel %vm404_vm1, 0.0, %v456_v26  ;;  %v460_v36 = vsel %vm404_vm1, %v454_v25, %v435_v24 }
 0x144   : > { %v464_v38 = vperm.slane %v460_v36, %v1724_v29  ;;  %v465_v39 = vrot.slane %v455_v34, 4  ;;  %v475_v40 = vperm.slane %v471_v28, %v1724_v29  ;;  %v477_v41 = vsel %vm404_vm1, %v476_v30, %v457_v35 }
 0x145   : > { %v453_v42 = vsel %vm404_vm1, 0.0, %v452_v33  ;;  %v481_v43 = vperm.slane %v477_v41, %v1724_v29  ;;  %v609_v44 = vperm.slane %v601_v11, %v1737_v45  ;;  %v610_v46 = vrot.slane %v593_v31, 4 }
 0x146   : > { %v466_v47 = vsel %vm404_vm1, %v465_v39, %v453_v42  ;;  %v484_v48 = vrot.slane %v464_v38, 4  ;;  %v496_v49 = vrot.slane %v475_v40, 4  ;;  %v612_v50 = vrot.slane %v597_v23, 4 }
 0x147   : > { %v470_v51 = vperm.slane %v466_v47, %v1724_v29  ;;  %v494_v54 = vrot.slane %v481_v43, 4  ;;  %v614_v55 = vrot.slane %v605_v32, 4  ;;  %v616_v59 = vrot.slane %v609_v44, 4 }
 0x148   : > { %v497_v57 = vsel %vm404_vm1, %v481_v43, %v496_v49  ;;  %v613_v58 = vsel %vm404_vm1, 0.0, %v612_v50  ;;  %v618_v60 = vsel %vm404_vm1, %v612_v50, %v593_v31  ;;  %v611_v4 = vsel %vm404_vm1, 0.0, %v610_v46 }
 0x149   : > { %v482_v61 = vrot.slane %v470_v51, 4  ;;  %v485_v62 = vsel %vm404_vm1, %v470_v51, %v484_v48  ;;  %v495_v63 = vsel %vm404_vm1, %v494_v54, %v475_v40  ;;  %v505_v0 = vperm.slane %v497_v57, %v1737_v45 }
 0x14a   : > { %v493_v1 = vperm.slane %v485_v62, %v1737_v45  ;;  %v501_v2 = vperm.slane %v495_v63, %v1737_v45  ;;  %v617_v5 = vsel %vm404_vm1, 0.0, %v616_v59  ;;  %v615_v8 = vsel %vm404_vm1, 0.0, %v614_v55 }
 0x14b   : > { %v483_v6 = vsel %vm404_vm1, %v482_v61, %v464_v38  ;;  %v510_v7 = vrot.slane %v505_v0, 4  ;;  %v623_v9 = vrot.slane %v613_v58, 4  ;;  %v622_v13 = vperm.slane %v618_v60, %v1724_v29 }
 0x14c   : > { %v489_v11 = vperm.slane %v483_v6, %v1737_v45  ;;  %v506_v12 = vrot.slane %v501_v2, 4  ;;  %v629_v14 = vsel %vm404_vm1, %v616_v59, %v605_v32  ;;  %v634_v17 = vrot.slane %v617_v5, 4 }
 0x14d   : > { %v624_v15 = vsel %vm404_vm1, %v623_v9, %v611_v4  ;;  %v633_v16 = vperm.slane %v629_v14, %v1724_v29  ;;  %v755_v18 = vrot.slane %v1741_v52, 4  ;;  %v730_v19 = vperm.slane %v1751_v3, %v1724_v29 }
 0x14e   : > { %v744_v20 = vsel %vm404_vm1, %v743_v53, %v726_v56  ;;  %v1810_v21 = vsel %vm404_vm1, %v510_v7, %v493_v1  ;;  %v512_v22 = vrot.slane %v493_v1, 4  ;;  %v628_v23 = vperm.slane %v624_v15, %v1724_v29 }
 0x14f   : > { %v635_v10 = vsel %vm404_vm1, %v634_v17, %v615_v8  ;;  %v1815_v24 = vsel %vm404_vm1, %v506_v12, %v489_v11  ;;  %v642_v26 = vrot.slane %v622_v13, 4  ;;  %v654_v27 = vrot.slane %v633_v16, 4 }
 0x150   : > { %v639_v25 = vperm.slane %v635_v10, %v1724_v29  ;;  %v508_v3 = vrot.slane %v489_v11, 4  ;;  %v640_v28 = vrot.slane %v628_v23, 4  ;;  %v745_v30 = vrot.slane %v726_v56, 4 }
 0x151   : > { %v750_v53 = vperm.slane %v744_v20, %v1737_v45  ;;  %v643_v31 = vsel %vm404_vm1, %v628_v23, %v642_v26  ;;  %v756_v34 = vsel %vm404_vm1, %v755_v18, %v730_v19  ;;  %v757_v43 = vrot.slane %v730_v19, 4 }
 0x152   : > { %v652_v32 = vrot.slane %v639_v25, 4  ;;  %v655_v33 = vsel %vm404_vm1, %v639_v25, %v654_v27  ;;  %v641_v35 = vsel %vm404_vm1, %v640_v28, %v622_v13  ;;  %v651_v36 = vperm.slane %v643_v31, %v1737_v45 }
 0x153   : > { %v663_v38 = vperm.slane %v655_v33, %v1737_v45  ;;  %v746_v39 = vsel %vm404_vm1, %v1729_v37, %v745_v30  ;;  %v647_v40 = vperm.slane %v641_v35, %v1737_v45  ;;  %v762_v48 = vperm.slane %v756_v34, %v1737_v45 }
 0x154   : > { %v653_v41 = vsel %vm404_vm1, %v652_v32, %v633_v16  ;;  %v754_v42 = vperm.slane %v746_v39, %v1737_v45  ;;  %v670_v47 = vrot.slane %v651_v36, 4  ;;  %v1836_v49 = vsel %vm404_vm1, %v505_v0, %v512_v22 }
 0x155   : > { %v659_v44 = vperm.slane %v653_v41, %v1737_v45  ;;  %v668_v46 = vrot.slane %v663_v38, 4  ;;  %v666_v37 = vrot.slane %v647_v40, 4  ;;  %v758_v50 = vsel %vm404_vm1, %v1741_v52, %v757_v43 }
 0x156   : > { %v769_v51 = vrot.slane %v754_v42, 4  ;;  %v766_v56 = vperm.slane %v758_v50, %v1737_v45  ;;  %v767_v57 = vrot.slane %v750_v53, 4  ;;  %v1850_v58 = vsel %vm404_vm1, %v501_v2, %v508_v3 }
 0x157   : > { %v664_v54 = vrot.slane %v659_v44, 4  ;;  %v669_v55 = vsel %vm404_vm1, %v668_v46, %v651_v36  ;;  %v667_v59 = vsel %vm404_vm1, %v659_v44, %v666_v37  ;;  %v671_v52 = vsel %vm404_vm1, %v663_v38, %v670_v47 }
 0x158   : > { %v674_v60 = vpack.c.bf16 %v669_v55, %v669_v55  ;;  %v673_v62 = vpack.c.bf16 %v667_v59, %v667_v59  ;;  %v770_v63 = vsel %vm404_vm1, 0.0, %v769_v51  ;;  %v771_v0 = vrot.slane %v762_v48, 4 }
 0x159   : > { %v665_v61 = vsel %vm404_vm1, %v664_v54, %v647_v40  ;;  %v773_v4 = vrot.slane %v766_v56, 4  ;;  %v775_v5 = vsel %vm404_vm1, %v769_v51, %v750_v53  ;;  %v780_v6 = vrot.slane %v770_v63, 4 }
 0x15a   : > { %v672_v1 = vpack.c.bf16 %v665_v61, %v665_v61  ;;  %v675_v2 = vpack.c.bf16 %v671_v52, %v671_v52  ;;  %v768_v7 = vsel %vm404_vm1, 0.0, %v767_v57  ;;  %v779_v8 = vperm.slane %v775_v5, %v1724_v29  ;;  %677 = vst.msk [vmem:[%s350_s12 + $0x4] sm:$0xf] %vm518_vm2, %v673_v62 }
 0x15b   : > { %v514_v9 = vpack.c.bf16 %v1815_v24, %v1815_v24  ;;  %v774_v11 = vsel %vm404_vm1, 0.0, %v773_v4  ;;  %v781_v12 = vsel %vm404_vm1, %v780_v6, %v768_v7  ;;  %v786_v13 = vsel %vm404_vm1, %v773_v4, %v762_v48  ;;  %678 = vst.msk [vmem:[%s350_s12 + $0x8] sm:$0xf] %vm518_vm2, %v674_v60 }
 0x15c   : > { %676 = vst.msk [vmem:[%s350_s12] sm:$0xf] %vm518_vm2, %v672_v1  ;;  %v785_v14 = vperm.slane %v781_v12, %v1724_v29  ;;  %v790_v15 = vperm.slane %v786_v13, %v1724_v29  ;;  %v791_v16 = vrot.slane %v774_v11, 4  ;;  %v799_v17 = vrot.slane %v779_v8, 4 }
 0x15d   : > { %v515_v18 = vpack.c.bf16 %v1850_v58, %v1850_v58  ;;  %v516_v19 = vpack.c.bf16 %v1810_v21, %v1810_v21  ;;  %v772_v20 = vsel %vm404_vm1, 0.0, %v771_v0  ;;  %679 = vst.msk [vmem:[%s350_s12 + $0xc] sm:$0xf] %vm518_vm2, %v675_v2  ;;  %v517_v21 = vpack.c.bf16 %v1836_v49, %v1836_v49  ;;  %s1407_s12 = scalar_lea.hbm %s1406_s28, 16 }
 0x15e   : > { %v792_v22 = vsel %vm404_vm1, %v791_v16, %v772_v20  ;;  %v797_v23 = vrot.slane %v785_v14, 4  ;;  %v800_v10 = vsel %vm404_vm1, %v785_v14, %v799_v17  ;;  %v811_v24 = vrot.slane %v790_v15, 4  ;;  %p1408_p1 = scmp.ne.s32.totalorder %s1406_s28, %s1407_s12  ;;  %p1413_p11 = scmp.lt.s32.totalorder %s1411_s7, %s1407_s12 }
 0x15f   : > { %v796_v25 = vperm.slane %v792_v22, %v1724_v29  ;;  %v808_v26 = vperm.slane %v800_v10, %v1737_v45 }
 0x160   : > { %p1409_p3 = pnand %p1408_p1, %p1679_p4  ;;  %p1414_p12 = por %p1413_p11, %p1412_p10 }
 0x162   : > { %p1410_p9 = pneg %p1409_p3 }
 0x164   : > { %p1415_p13 = pnand %p1414_p12, %p1410_p9 }
 0x166   : > { %1418 = shalt.err (!%p1415_p13)
}
 0x167   : > { %s1553_s27 = smov 64   ;;  %s1554_s29 = smov 4   ;;  %v798_v29 = vsel %vm404_vm1, %v797_v23, %v779_v8  ;;  %519 = vst.msk [vmem:[%s1889_s30] sm:$0xf] %vm518_vm2, %v514_v9  ;;  %v809_v3 = vrot.slane %v796_v25, 4  ;;  %v812_v28 = vsel %vm404_vm1, %v796_v25, %v811_v24  ;;  %v827_v30 = vrot.slane %v808_v26, 4 }
 0x168   : > { %1159 = dma.vmem_to_hbm [thread:$0]  (%p1679_p4), %s1876_s9, 256, %s882_s19, %s1900_s20, %s1553_s27, %s1553_s27, %s1554_s29   ;;  %v804_v27 = vperm.slane %v798_v29, %v1737_v45  ;;  %v820_v53 = vperm.slane %v812_v28, %v1737_v45 }
 0x169   : > { %520 = vst.msk [vmem:[%s1889_s30 + $0x4] sm:$0xf] %vm518_vm2, %v515_v18  ;;  %v810_v31 = vsel %vm404_vm1, %v809_v3, %v790_v15  ;;  %s896_s9 = scalar_lea.hbm %s2011_s6, %s1831_s10  ;;  %s838_s19 = scalar_lea.sflag [#allocation4], %s1701_s1 }
 0x16a   : > { %521 = vst.msk [vmem:[%s1889_s30 + $0x8] sm:$0xf] %vm518_vm2, %v516_v19  ;;  %v823_v32 = vrot.slane %v804_v27, 4  ;;  %v816_v33 = vperm.slane %v810_v31, %v1737_v45  ;;  %v825_v34 = vrot.slane %v820_v53, 4  ;;  %v828_v35 = vsel %vm404_vm1, %v820_v53, %v827_v30  ;;  %s1433_s28 = sshra.s32 %s864_s24, 4  ;;  %s1439_s7 = scalar_lea.hbm %s2009_s4, 32  ;;  %s1434_s28 = int_to_ptr.hbm [resolvable:$true] %s1433_s28 }
 0x16b   : > { %522 = vst.msk [vmem:[%s1889_s30 + $0xc] sm:$0xf] %vm518_vm2, %v517_v21  ;;  %s1435_s12 = scalar_lea.hbm %s1434_s28, 16  ;;  %p1440_p8 = scmp.lt.s32.totalorder %s1434_s28, %s2009_s4 }
 0x16c   : > { %p1436_p0 = scmp.ne.s32.totalorder %s1434_s28, %s1435_s12  ;;  %p1441_p1 = scmp.lt.s32.totalorder %s1439_s7, %s1435_s12 }
 0x16e   : > { %p1437_p2 = pnand %p1436_p0, %p1679_p4  ;;  %p1442_p3 = por %p1441_p1, %p1440_p8 }
 0x170   : > { %p1438_p5 = pneg %p1437_p2 }
 0x172   : > { %p1443_p9 = pnand %p1442_p3, %p1438_p5 }
 0x174   : > { %1446 = shalt.err (!%p1443_p9)
}
 0x175   : > { %1158 = dma.vmem_to_hbm [thread:$0]  (%p1679_p4), %s862_s11, 256, %s864_s24, %s838_s19, %s1553_s27, %s1553_s27, %s1554_s29   ;;  %v832_v45 = vpack.c.bf16 %v828_v35, %v828_v35  ;;  %v821_v36 = vrot.slane %v816_v33, 4  ;;  %v824_v38 = vsel %vm404_vm1, %v816_v33, %v823_v32  ;;  %v826_v39 = vsel %vm404_vm1, %v825_v34, %v808_v26 }
 0x176   : > { %s1957_s1 = sshll.u32 %s896_s9, 4  ;;  %s357_s30 = scalar_lea.vmem [#allocation13], %s1841_s16  ;;  %v830_v40 = vpack.c.bf16 %v824_v38, %v824_v38  ;;  %v831_v41 = vpack.c.bf16 %v826_v39, %v826_v39  ;;  %s900_s1 = int_to_ptr.hbm [resolvable:$true] %s1957_s1 }
 0x177   : > { %s897_s2 = sshll.u32 %s357_s30, 4  ;;  %836 = vst.msk [vmem:[%s357_s30 + $0xc] sm:$0xf] %vm518_vm2, %v832_v45  ;;  %v822_v42 = vsel %vm404_vm1, %v821_v36, %v804_v27  ;;  %s1461_s11 = sshra.s32 %s900_s1, 4  ;;  %s898_s2 = int_to_ptr.vmem [resolvable:$true] %s897_s2  ;;  %s1462_s11 = int_to_ptr.hbm [resolvable:$true] %s1461_s11 }
 0x178   : > { %v829_v43 = vpack.c.bf16 %v822_v42, %v822_v42  ;;  %834 = vst.msk [vmem:[%s357_s30 + $0x4] sm:$0xf] %vm518_vm2, %v830_v40  ;;  %s1463_s16 = scalar_lea.hbm %s1462_s11, 16  ;;  %s1467_s19 = scalar_lea.hbm %s2011_s6, 32 }
 0x179   : > { %835 = vst.msk [vmem:[%s357_s30 + $0x8] sm:$0xf] %vm518_vm2, %v831_v41  ;;  %p1464_p10 = scmp.ne.s32.totalorder %s1462_s11, %s1463_s16  ;;  %p1468_p13 = scmp.lt.s32.totalorder %s1462_s11, %s2011_s6 }
 0x17a   : > { %833 = vst.msk [vmem:[%s357_s30] sm:$0xf] %vm518_vm2, %v829_v43  ;;  %p1469_p0 = scmp.lt.s32.totalorder %s1467_s19, %s1463_s16 }
 0x17b   : > { %p1465_p11 = pnand %p1464_p10, %p1679_p4 }
 0x17c   : > { %p1470_p2 = por %p1469_p0, %p1468_p13 }
 0x17d   : > { %p1466_p12 = pneg %p1465_p11 }
 0x17f   : > { %p1471_p5 = pnand %p1470_p2, %p1466_p12 }
 0x181   : > { %1474 = shalt.err (!%p1471_p5)
}
 0x182   : > { %1160 = dma.vmem_to_hbm [thread:$0]  (%p1679_p4), %s898_s2, 256, %s900_s1, %s1900_s20, %s1553_s27, %s1553_s27, %s1554_s29  }
 0x183 PF: > { %s914_s18 = sand.u32 1, %s1521_s21   ;;  %p1179_p8 = pnand %p1086_p6, %p1687_p7 }
 0x184   : > { %s915_s17 = scalar_lea.sflag [#allocation4], %s914_s18 }
 0x185   : > { %p1180_p1 = pneg %p1179_p8 }
 0x187   : > { %1512 = dma.done.wait (%p1180_p1), %s915_s17, 256  }
 0x188   : > { %1514 = vsyncadd (%p1180_p1), %s915_s17, 4294967040  ;;  %s2025_s7 = sadd.s32 4294967294, %s1541_s26  }
 0x189   : > { %s924_s13 = sand.u32 1, %s2025_s7  }
 0x18a   : > { %s925_s10 = scalar_lea.sflag [#allocation12], %s924_s13 }
 0x18b   : > { %1516 = dma.done.wait (%p1180_p1), %s925_s10, 512  }
 0x18c   : > { %1518 = vsyncadd (%p1180_p1), %s925_s10, 4294966784  ;;  %s28_s26 = sadd.s32 1, %s1541_s26   ;;  %s2026_s21 = smov %s1525_s22 }
 0x18d   : > { %p25_p4 = scmp.ge.s32.totalorder %s28_s26, 4   ;;  %s2027_s22 = smov %s1529_s23 }
 0x18e   : > { %s2028_s23 = smov %s1685_s14  ;;  %s2029_s24 = smov %s1537_s25 }
 0x18f   : > { %s2030_s25 = smov %s2032_s8  ;;  %27 = sbr.rel (!%p25_p4) target bundleno = 14 (0xe), region = 125 }
 0x194   :  { %941 = vsyncpa [#allocation3], 1 }
 0x195   :  { %943 = vsyncpa [#allocation3 + $0x1], 1 }
 0x196   :  { %944 = vsyncpa [#allocation6], 1 }
 0x197   :  { %945 = vsyncpa [#allocation9], 1 }
 0x198   :  { %946 = vsyncpa [#allocation4], 1 }
 0x199   :  { %948 = vsyncpa [#allocation4 + $0x1], 1 }
 0x19a   :  { %949 = vsyncpa [#allocation12], 1 }
 0x19b   :  { %951 = vsyncpa [#allocation12 + $0x1], 1 }

</bundles_post_ra>
